<compile_context>
chip_gen: v7x
topology: tpu7x:2x2x1
jax: 0.10.0
libtpu: 0.0.40
codegen_flags: <defaults>
</compile_context>

<pallas_src>
import functools

import numpy as np
import jax
import jax.numpy as jnp
from jax import lax
from jax.experimental import pallas as pl
from jax.experimental.pallas import tpu as pltpu


# ----------------------------- Pallas kernel ------------------------------ #
def sc_layer_kernel(gx_ref,            # [B, T, 8H]  per-token gate pre-activations
                    wh_ref,            # [2H, 8H]    block-diagonal recurrent weights
                    fcw_ref,           # [2H, 1]
                    fcb_ref,           # [1, 1]
                    out_ref,           # [B, 1]
                    *, seq_len):
    T = seq_len
    B = gx_ref.shape[0]
    H8 = gx_ref.shape[2]               # 8H
    H2 = wh_ref.shape[0]               # 2H
    H = H2 // 2

    # fwd/bwd lane select: inside every 2H gate chunk the first H lanes belong
    # to the forward direction (reads x[s]); the next H to the backward
    # direction (reads x[T-1-s]).  Precomputed once, reused every step.
    col = lax.broadcasted_iota(jnp.int32, (B, H8), 1)
    fwd_mask = (col % H2) < H

    gx = gx_ref[...]                   # [B, T, 8H], ~16 KiB: load once
    wh = wh_ref[...]                   # loop-invariant
    # TODO(synk): if the bundle dump shows the [2H,8H] RHS re-pushed per step,
    # drive the MXU explicitly (pltpu.matmul_push_rhs / matmul_acc_lhs / pop).

    h = jnp.zeros((B, H2), jnp.float32)
    c = jnp.zeros((B, H2), jnp.float32)
    hsum = jnp.zeros((B, H2), jnp.float32)

    # Single fused bidirectional recurrence, fully unrolled (T static, small).
    for s in range(T):
        gate_x = jnp.where(fwd_mask, gx[:, s, :], gx[:, T - 1 - s, :])       # [B, 8H]
        gates = gate_x + jnp.dot(h, wh, preferred_element_type=jnp.float32)  # [B, 8H]
        # Minimal transcendental work: sigmoid only on i/f/o lanes, tanh on g.
        i_g = jax.nn.sigmoid(gates[:, 0 * H2:1 * H2])   # [i_f | i_b]
        f_g = jax.nn.sigmoid(gates[:, 1 * H2:2 * H2])   # [f_f | f_b]
        o_g = jax.nn.sigmoid(gates[:, 2 * H2:3 * H2])   # [o_f | o_b]
        g_g = jnp.tanh(gates[:, 3 * H2:4 * H2])         # [g_f | g_b]
        c = f_g * c + i_g * g_g
        h = o_g * jnp.tanh(c)
        hsum = hsum + h

    # hiddens.mean(dim=1) over the concatenated bidirectional states
    mean_h = hsum * (1.0 / T)                           # [B, 2H] = [fwd | bwd]

    # fc_penalty: Linear(2H, 1)
    out_ref[...] = (jnp.dot(mean_h, fcw_ref[...], preferred_element_type=jnp.float32)
                    + fcb_ref[...])


# ------------------------ offline weight fusion ---------------------------- #
def _split_gates(w, H):
    """w: [in, 4H] in PyTorch gate order (i, f, g, o) -> returns (i, f, o, g)."""
    return w[:, 0:H], w[:, H:2 * H], w[:, 3 * H:4 * H], w[:, 2 * H:3 * H]


def fuse_sc_layer_params(params):
    """One-time weight fusion (NOT on the per-call path).

    Returns a dict with:
      gate_table: [VOCAB, 8H]  token -> (Embedding @ W_ih + b_ih + b_hh) row,
                  both directions, columns [i_f|i_b|f_f|f_b|o_f|o_b|g_f|g_b].
      wh:         [2H, 8H]     block-diagonal recurrent weights.
      fc_w, fc_b: fc_penalty weights (pre-transposed [2H,1] / [1,1]).
    """
    H = params["whh_f"].shape[0]

    # Input weights, no zero padding: fwd weights feed fwd columns, bwd -> bwd.
    i_f, f_f, o_f, g_f = _split_gates(params["wih_f"], H)       # [E, H]
    i_b, f_b, o_b, g_b = _split_gates(params["wih_b"], H)
    wx = jnp.concatenate([i_f, i_b, f_f, f_b, o_f, o_b, g_f, g_b], axis=1)   # [E, 8H]

    bi_f, bf_f, bo_f, bg_f = _split_gates(params["b_f"], H)     # [1, H]
    bi_b, bf_b, bo_b, bg_b = _split_gates(params["b_b"], H)
    b = jnp.concatenate([bi_f, bi_b, bf_f, bf_b, bo_f, bo_b, bg_f, bg_b], axis=1)

    emb = params["embedding"].astype(jnp.float32)
    gate_table = emb @ wx + b                                    # [VOCAB, 8H]

    hi_f, hf_f, ho_f, hg_f = _split_gates(params["whh_f"], H)   # [H, H]
    hi_b, hf_b, ho_b, hg_b = _split_gates(params["whh_b"], H)
    Zh = jnp.zeros((H, H), jnp.float32)
    wh_top = jnp.concatenate([hi_f, Zh, hf_f, Zh, ho_f, Zh, hg_f, Zh], axis=1)  # h_f rows
    wh_bot = jnp.concatenate([Zh, hi_b, Zh, hf_b, Zh, ho_b, Zh, hg_b], axis=1)  # h_b rows
    wh = jnp.concatenate([wh_top, wh_bot], axis=0)                              # [2H, 8H]

    return {
        "gate_table": jax.device_put(gate_table),
        "wh": jax.device_put(wh),
        "fc_w": jax.device_put(params["fc_w"].astype(jnp.float32)),
        "fc_b": jax.device_put(params["fc_b"].astype(jnp.float32)),
    }


# ------------------------------- wrapper ----------------------------------- #
def sc_layer_forward(token_ids, fused):
    """token_ids: int32 [B, T].  Returns penalty [B, 1, 1] (base mode)."""
    B, T = token_ids.shape

    # Single remaining XLA glue op: token -> gate-preactivation row gather.
    gx = jnp.take(fused["gate_table"], token_ids, axis=0)       # [B, T, 8H]

    vspec = pl.BlockSpec(memory_space=pltpu.MemorySpace.VMEM)
    kernel = functools.partial(sc_layer_kernel, seq_len=T)

    # Tiny problem (<100 KiB of inputs): single gridless call, all VMEM-resident.
    # TODO(synk): for large B/T, add a 'parallel' B grid axis (v7x has 2 TCs),
    # stream time chunks, and set vmem_limit_bytes against v7x's 64 MiB VMEM.
    penalty = pl.pallas_call(
        kernel,
        out_shape=jax.ShapeDtypeStruct((B, 1), jnp.float32),
        in_specs=[vspec] * 4,
        out_specs=vspec,
    )(gx, fused["wh"], fused["fc_w"], fused["fc_b"])

    return penalty.reshape(B, 1, 1)   # == fc_penalty(q_emb), q_emb: [B,1,2H]


# --------------------------- pure-JAX reference ---------------------------- #
def _lstm_dir_ref(x_bte, wih, whh, b, reverse):
    x = x_bte[:, ::-1, :] if reverse else x_bte
    xs = jnp.transpose(x, (1, 0, 2))                 # [T, B, E]
    B = x.shape[0]
    H = whh.shape[0]

    def step(carry, x_t):
        h, c = carry
        gates = x_t @ wih + h @ whh + b
        i_g = jax.nn.sigmoid(gates[:, 0:H])
        f_g = jax.nn.sigmoid(gates[:, H:2 * H])
        g_g = jnp.tanh(gates[:, 2 * H:3 * H])
        o_g = jax.nn.sigmoid(gates[:, 3 * H:4 * H])
        c_new = f_g * c + i_g * g_g
        h_new = o_g * jnp.tanh(c_new)
        return (h_new, c_new), h_new

    zeros = jnp.zeros((B, H), jnp.float32)
    _, hs = lax.scan(step, (zeros, zeros), xs)       # [T, B, H]
    return jnp.mean(hs, axis=0)                      # [B, H]


def sc_layer_reference(token_ids, params):
    emb = jnp.take(params["embedding"], token_ids, axis=0)
    mf = _lstm_dir_ref(emb, params["wih_f"], params["whh_f"], params["b_f"], False)
    mb = _lstm_dir_ref(emb, params["wih_b"], params["whh_b"], params["b_b"], True)
    mean_h = jnp.concatenate([mf, mb], axis=-1)
    return (mean_h @ params["fc_w"] + params["fc_b"]).reshape(-1, 1, 1)


# ------------------------------ param init --------------------------------- #
def init_params(key, vocab_size, emb_dim, hid_dim):
    ks = jax.random.split(key, 12)
    s = 0.1
    H4 = 4 * hid_dim

    def combine_bias(k1, k2):
        return (s * jax.random.normal(k1, (1, H4), jnp.float32)
                + s * jax.random.normal(k2, (1, H4), jnp.float32))  # b_ih + b_hh

    params = {
        "embedding": s * jax.random.normal(ks[0], (vocab_size, emb_dim), jnp.float32),
        # forward direction (weights stored transposed: [in, 4H], PyTorch gate order i,f,g,o)
        "wih_f": s * jax.random.normal(ks[1], (emb_dim, H4), jnp.float32),
        "whh_f": s * jax.random.normal(ks[2], (hid_dim, H4), jnp.float32),
        "b_f":   combine_bias(ks[3], ks[4]),
        # backward direction
        "wih_b": s * jax.random.normal(ks[5], (emb_dim, H4), jnp.float32),
        "whh_b": s * jax.random.normal(ks[6], (hid_dim, H4), jnp.float32),
        "b_b":   combine_bias(ks[7], ks[8]),
        # fc_penalty: Linear(2H, 1), stored transposed
        "fc_w": s * jax.random.normal(ks[9], (2 * hid_dim, 1), jnp.float32),
        "fc_b": s * jax.random.normal(ks[10], (1, 1), jnp.float32),
    }
    return params


# --------------------------------- main ------------------------------------ #
if __name__ == "__main__":
    # Small shapes consistent with the module (vocab_size, emb_dim, hid_dim, seq)
    VOCAB, EMB, HID, B, T = 100, 128, 32, 2, 8

    key = jax.random.PRNGKey(0)
    k_params, k_tok = jax.random.split(key)
    params = init_params(k_params, VOCAB, EMB, HID)
    token_ids = jax.random.randint(k_tok, (B, T), 0, VOCAB, dtype=jnp.int32)

    fused = fuse_sc_layer_params(params)          # one-time offline weight fusion

    penalty = jax.block_until_ready(sc_layer_forward(token_ids, fused))
    ref = jax.block_until_ready(sc_layer_reference(token_ids, params))

    assert penalty.shape == (B, 1, 1), penalty.shape
    np.testing.assert_allclose(np.asarray(penalty), np.asarray(ref),
                               rtol=1e-4, atol=1e-5)

    print("KERNEL_OK")
</pallas_src>

<mosaic_0001>
module attributes {stable_mosaic.version = 11 : i64} {
  func.func @sc_layer_kernel(%arg0: memref<2x8x256xf32, #tpu.memory_space<vmem>>, %arg1: memref<64x256xf32, #tpu.memory_space<vmem>>, %arg2: memref<64x1xf32, #tpu.memory_space<vmem>>, %arg3: memref<1x1xf32, #tpu.memory_space<vmem>>, %arg4: memref<2x1xf32, #tpu.memory_space<vmem>>) attributes {dimension_semantics = [], scalar_prefetch = 0 : i64, scratch_operands = 0 : i64, tpu.core_type = #tpu.core_type<tc>} {
    %0 = tpu.iota {dimensions = array<i32: 1>} : vector<2x256xi32>
    %c64_i32 = arith.constant 64 : i32
    %c0_i32 = arith.constant 0 : i32
    %1 = arith.cmpi eq, %c64_i32, %c0_i32 : i32
    %c1_i32 = arith.constant 1 : i32
    %2 = arith.select %1, %c1_i32, %c64_i32 : i32
    %3 = vector.broadcast %2 : i32 to vector<2x256xi32>
    %4 = arith.remsi %0, %3 : vector<2x256xi32>
    %c0_i32_0 = arith.constant 0 : i32
    %5 = vector.broadcast %c0_i32_0 : i32 to vector<2x256xi32>
    %6 = arith.cmpi ne, %4, %5 : vector<2x256xi32>
    %c0_i32_1 = arith.constant 0 : i32
    %7 = vector.broadcast %c0_i32_1 : i32 to vector<2x256xi32>
    %8 = arith.cmpi slt, %4, %7 : vector<2x256xi32>
    %c0_i32_2 = arith.constant 0 : i32
    %9 = arith.cmpi slt, %2, %c0_i32_2 : i32
    %10 = vector.broadcast %9 : i1 to vector<2x256xi1>
    %11 = vector.broadcast %10 : vector<2x256xi1> to vector<2x256xi1>
    %12 = arith.xori %8, %11 : vector<2x256xi1>
    %13 = arith.andi %12, %6 : vector<2x256xi1>
    %14 = vector.broadcast %2 : i32 to vector<2x256xi32>
    %15 = arith.addi %4, %14 : vector<2x256xi32>
    %16 = arith.select %13, %15, %4 : vector<2x256xi1>, vector<2x256xi32>
    %c32_i32 = arith.constant 32 : i32
    %17 = vector.broadcast %c32_i32 : i32 to vector<2x256xi32>
    %18 = arith.cmpi slt, %16, %17 : vector<2x256xi32>
    %c0 = arith.constant 0 : index
    %c0_3 = arith.constant 0 : index
    %c0_4 = arith.constant 0 : index
    %19 = vector.load %arg0[%c0, %c0_3, %c0_4] : memref<2x8x256xf32, #tpu.memory_space<vmem>>, vector<2x8x256xf32>
    %c0_5 = arith.constant 0 : index
    %c0_6 = arith.constant 0 : index
    %20 = vector.load %arg1[%c0_5, %c0_6] : memref<64x256xf32, #tpu.memory_space<vmem>>, vector<64x256xf32>
    %cst = arith.constant 0.000000e+00 : f32
    %21 = vector.broadcast %cst : f32 to vector<2x64xf32>
    %cst_7 = arith.constant 0.000000e+00 : f32
    %22 = vector.broadcast %cst_7 : f32 to vector<2x64xf32>
    %cst_8 = arith.constant 0.000000e+00 : f32
    %23 = vector.broadcast %cst_8 : f32 to vector<2x64xf32>
    %24 = vector.extract_strided_slice %19 {offsets = [0, 0, 0], sizes = [2, 1, 256], strides = [1, 1, 1]} : vector<2x8x256xf32> to vector<2x1x256xf32>
    %25 = vector.shape_cast %24 : vector<2x1x256xf32> to vector<2x256xf32>
    %26 = vector.extract_strided_slice %19 {offsets = [0, 7, 0], sizes = [2, 1, 256], strides = [1, 1, 1]} : vector<2x8x256xf32> to vector<2x1x256xf32>
    %27 = vector.shape_cast %26 : vector<2x1x256xf32> to vector<2x256xf32>
    %28 = arith.select %18, %25, %27 : vector<2x256xi1>, vector<2x256xf32>
    %cst_9 = arith.constant dense<0.000000e+00> : vector<2x256xf32>
    %29 = tpu.matmul %21, %20, %cst_9 {dimension_numbers = #tpu.dot_dimension_numbers<[1], [0], [0], [1], [0, 0, 1, 1], [], []>} : vector<2x64xf32>, vector<64x256xf32>, vector<2x256xf32> -> vector<2x256xf32>
    %30 = arith.addf %28, %29 : vector<2x256xf32>
    %31 = vector.extract_strided_slice %30 {offsets = [0, 0], sizes = [2, 64], strides = [1, 1]} : vector<2x256xf32> to vector<2x64xf32>
    %32 = arith.negf %31 : vector<2x64xf32>
    %33 = math.exp %32 : vector<2x64xf32>
    %cst_10 = arith.constant 1.000000e+00 : f32
    %34 = vector.broadcast %cst_10 : f32 to vector<2x64xf32>
    %35 = arith.addf %34, %33 : vector<2x64xf32>
    %36 = arith.divf %34, %35 : vector<2x64xf32>
    %37 = vector.extract_strided_slice %30 {offsets = [0, 64], sizes = [2, 64], strides = [1, 1]} : vector<2x256xf32> to vector<2x64xf32>
    %38 = arith.negf %37 : vector<2x64xf32>
    %39 = math.exp %38 : vector<2x64xf32>
    %cst_11 = arith.constant 1.000000e+00 : f32
    %40 = vector.broadcast %cst_11 : f32 to vector<2x64xf32>
    %41 = arith.addf %40, %39 : vector<2x64xf32>
    %42 = arith.divf %40, %41 : vector<2x64xf32>
    %43 = vector.extract_strided_slice %30 {offsets = [0, 128], sizes = [2, 64], strides = [1, 1]} : vector<2x256xf32> to vector<2x64xf32>
    %44 = arith.negf %43 : vector<2x64xf32>
    %45 = math.exp %44 : vector<2x64xf32>
    %cst_12 = arith.constant 1.000000e+00 : f32
    %46 = vector.broadcast %cst_12 : f32 to vector<2x64xf32>
    %47 = arith.addf %46, %45 : vector<2x64xf32>
    %48 = arith.divf %46, %47 : vector<2x64xf32>
    %49 = vector.extract_strided_slice %30 {offsets = [0, 192], sizes = [2, 64], strides = [1, 1]} : vector<2x256xf32> to vector<2x64xf32>
    %50 = math.tanh %49 : vector<2x64xf32>
    %51 = arith.mulf %42, %22 : vector<2x64xf32>
    %52 = arith.mulf %36, %50 : vector<2x64xf32>
    %53 = arith.addf %51, %52 : vector<2x64xf32>
    %54 = math.tanh %53 : vector<2x64xf32>
    %55 = arith.mulf %48, %54 : vector<2x64xf32>
    %56 = arith.addf %23, %55 : vector<2x64xf32>
    %57 = vector.extract_strided_slice %19 {offsets = [0, 1, 0], sizes = [2, 1, 256], strides = [1, 1, 1]} : vector<2x8x256xf32> to vector<2x1x256xf32>
    %58 = vector.shape_cast %57 : vector<2x1x256xf32> to vector<2x256xf32>
    %59 = vector.extract_strided_slice %19 {offsets = [0, 6, 0], sizes = [2, 1, 256], strides = [1, 1, 1]} : vector<2x8x256xf32> to vector<2x1x256xf32>
    %60 = vector.shape_cast %59 : vector<2x1x256xf32> to vector<2x256xf32>
    %61 = arith.select %18, %58, %60 : vector<2x256xi1>, vector<2x256xf32>
    %cst_13 = arith.constant dense<0.000000e+00> : vector<2x256xf32>
    %62 = tpu.matmul %55, %20, %cst_13 {dimension_numbers = #tpu.dot_dimension_numbers<[1], [0], [0], [1], [0, 0, 1, 1], [], []>} : vector<2x64xf32>, vector<64x256xf32>, vector<2x256xf32> -> vector<2x256xf32>
    %63 = arith.addf %61, %62 : vector<2x256xf32>
    %64 = vector.extract_strided_slice %63 {offsets = [0, 0], sizes = [2, 64], strides = [1, 1]} : vector<2x256xf32> to vector<2x64xf32>
    %65 = arith.negf %64 : vector<2x64xf32>
    %66 = math.exp %65 : vector<2x64xf32>
    %cst_14 = arith.constant 1.000000e+00 : f32
    %67 = vector.broadcast %cst_14 : f32 to vector<2x64xf32>
    %68 = arith.addf %67, %66 : vector<2x64xf32>
    %69 = arith.divf %67, %68 : vector<2x64xf32>
    %70 = vector.extract_strided_slice %63 {offsets = [0, 64], sizes = [2, 64], strides = [1, 1]} : vector<2x256xf32> to vector<2x64xf32>
    %71 = arith.negf %70 : vector<2x64xf32>
    %72 = math.exp %71 : vector<2x64xf32>
    %cst_15 = arith.constant 1.000000e+00 : f32
    %73 = vector.broadcast %cst_15 : f32 to vector<2x64xf32>
    %74 = arith.addf %73, %72 : vector<2x64xf32>
    %75 = arith.divf %73, %74 : vector<2x64xf32>
    %76 = vector.extract_strided_slice %63 {offsets = [0, 128], sizes = [2, 64], strides = [1, 1]} : vector<2x256xf32> to vector<2x64xf32>
    %77 = arith.negf %76 : vector<2x64xf32>
    %78 = math.exp %77 : vector<2x64xf32>
    %cst_16 = arith.constant 1.000000e+00 : f32
    %79 = vector.broadcast %cst_16 : f32 to vector<2x64xf32>
    %80 = arith.addf %79, %78 : vector<2x64xf32>
    %81 = arith.divf %79, %80 : vector<2x64xf32>
    %82 = vector.extract_strided_slice %63 {offsets = [0, 192], sizes = [2, 64], strides = [1, 1]} : vector<2x256xf32> to vector<2x64xf32>
    %83 = math.tanh %82 : vector<2x64xf32>
    %84 = arith.mulf %75, %53 : vector<2x64xf32>
    %85 = arith.mulf %69, %83 : vector<2x64xf32>
    %86 = arith.addf %84, %85 : vector<2x64xf32>
    %87 = math.tanh %86 : vector<2x64xf32>
    %88 = arith.mulf %81, %87 : vector<2x64xf32>
    %89 = arith.addf %56, %88 : vector<2x64xf32>
    %90 = vector.extract_strided_slice %19 {offsets = [0, 2, 0], sizes = [2, 1, 256], strides = [1, 1, 1]} : vector<2x8x256xf32> to vector<2x1x256xf32>
    %91 = vector.shape_cast %90 : vector<2x1x256xf32> to vector<2x256xf32>
    %92 = vector.extract_strided_slice %19 {offsets = [0, 5, 0], sizes = [2, 1, 256], strides = [1, 1, 1]} : vector<2x8x256xf32> to vector<2x1x256xf32>
    %93 = vector.shape_cast %92 : vector<2x1x256xf32> to vector<2x256xf32>
    %94 = arith.select %18, %91, %93 : vector<2x256xi1>, vector<2x256xf32>
    %cst_17 = arith.constant dense<0.000000e+00> : vector<2x256xf32>
    %95 = tpu.matmul %88, %20, %cst_17 {dimension_numbers = #tpu.dot_dimension_numbers<[1], [0], [0], [1], [0, 0, 1, 1], [], []>} : vector<2x64xf32>, vector<64x256xf32>, vector<2x256xf32> -> vector<2x256xf32>
    %96 = arith.addf %94, %95 : vector<2x256xf32>
    %97 = vector.extract_strided_slice %96 {offsets = [0, 0], sizes = [2, 64], strides = [1, 1]} : vector<2x256xf32> to vector<2x64xf32>
    %98 = arith.negf %97 : vector<2x64xf32>
    %99 = math.exp %98 : vector<2x64xf32>
    %cst_18 = arith.constant 1.000000e+00 : f32
    %100 = vector.broadcast %cst_18 : f32 to vector<2x64xf32>
    %101 = arith.addf %100, %99 : vector<2x64xf32>
    %102 = arith.divf %100, %101 : vector<2x64xf32>
    %103 = vector.extract_strided_slice %96 {offsets = [0, 64], sizes = [2, 64], strides = [1, 1]} : vector<2x256xf32> to vector<2x64xf32>
    %104 = arith.negf %103 : vector<2x64xf32>
    %105 = math.exp %104 : vector<2x64xf32>
    %cst_19 = arith.constant 1.000000e+00 : f32
    %106 = vector.broadcast %cst_19 : f32 to vector<2x64xf32>
    %107 = arith.addf %106, %105 : vector<2x64xf32>
    %108 = arith.divf %106, %107 : vector<2x64xf32>
    %109 = vector.extract_strided_slice %96 {offsets = [0, 128], sizes = [2, 64], strides = [1, 1]} : vector<2x256xf32> to vector<2x64xf32>
    %110 = arith.negf %109 : vector<2x64xf32>
    %111 = math.exp %110 : vector<2x64xf32>
    %cst_20 = arith.constant 1.000000e+00 : f32
    %112 = vector.broadcast %cst_20 : f32 to vector<2x64xf32>
    %113 = arith.addf %112, %111 : vector<2x64xf32>
    %114 = arith.divf %112, %113 : vector<2x64xf32>
    %115 = vector.extract_strided_slice %96 {offsets = [0, 192], sizes = [2, 64], strides = [1, 1]} : vector<2x256xf32> to vector<2x64xf32>
    %116 = math.tanh %115 : vector<2x64xf32>
    %117 = arith.mulf %108, %86 : vector<2x64xf32>
    %118 = arith.mulf %102, %116 : vector<2x64xf32>
    %119 = arith.addf %117, %118 : vector<2x64xf32>
    %120 = math.tanh %119 : vector<2x64xf32>
    %121 = arith.mulf %114, %120 : vector<2x64xf32>
    %122 = arith.addf %89, %121 : vector<2x64xf32>
    %123 = vector.extract_strided_slice %19 {offsets = [0, 3, 0], sizes = [2, 1, 256], strides = [1, 1, 1]} : vector<2x8x256xf32> to vector<2x1x256xf32>
    %124 = vector.shape_cast %123 : vector<2x1x256xf32> to vector<2x256xf32>
    %125 = vector.extract_strided_slice %19 {offsets = [0, 4, 0], sizes = [2, 1, 256], strides = [1, 1, 1]} : vector<2x8x256xf32> to vector<2x1x256xf32>
    %126 = vector.shape_cast %125 : vector<2x1x256xf32> to vector<2x256xf32>
    %127 = arith.select %18, %124, %126 : vector<2x256xi1>, vector<2x256xf32>
    %cst_21 = arith.constant dense<0.000000e+00> : vector<2x256xf32>
    %128 = tpu.matmul %121, %20, %cst_21 {dimension_numbers = #tpu.dot_dimension_numbers<[1], [0], [0], [1], [0, 0, 1, 1], [], []>} : vector<2x64xf32>, vector<64x256xf32>, vector<2x256xf32> -> vector<2x256xf32>
    %129 = arith.addf %127, %128 : vector<2x256xf32>
    %130 = vector.extract_strided_slice %129 {offsets = [0, 0], sizes = [2, 64], strides = [1, 1]} : vector<2x256xf32> to vector<2x64xf32>
    %131 = arith.negf %130 : vector<2x64xf32>
    %132 = math.exp %131 : vector<2x64xf32>
    %cst_22 = arith.constant 1.000000e+00 : f32
    %133 = vector.broadcast %cst_22 : f32 to vector<2x64xf32>
    %134 = arith.addf %133, %132 : vector<2x64xf32>
    %135 = arith.divf %133, %134 : vector<2x64xf32>
    %136 = vector.extract_strided_slice %129 {offsets = [0, 64], sizes = [2, 64], strides = [1, 1]} : vector<2x256xf32> to vector<2x64xf32>
    %137 = arith.negf %136 : vector<2x64xf32>
    %138 = math.exp %137 : vector<2x64xf32>
    %cst_23 = arith.constant 1.000000e+00 : f32
    %139 = vector.broadcast %cst_23 : f32 to vector<2x64xf32>
    %140 = arith.addf %139, %138 : vector<2x64xf32>
    %141 = arith.divf %139, %140 : vector<2x64xf32>
    %142 = vector.extract_strided_slice %129 {offsets = [0, 128], sizes = [2, 64], strides = [1, 1]} : vector<2x256xf32> to vector<2x64xf32>
    %143 = arith.negf %142 : vector<2x64xf32>
    %144 = math.exp %143 : vector<2x64xf32>
    %cst_24 = arith.constant 1.000000e+00 : f32
    %145 = vector.broadcast %cst_24 : f32 to vector<2x64xf32>
    %146 = arith.addf %145, %144 : vector<2x64xf32>
    %147 = arith.divf %145, %146 : vector<2x64xf32>
    %148 = vector.extract_strided_slice %129 {offsets = [0, 192], sizes = [2, 64], strides = [1, 1]} : vector<2x256xf32> to vector<2x64xf32>
    %149 = math.tanh %148 : vector<2x64xf32>
    %150 = arith.mulf %141, %119 : vector<2x64xf32>
    %151 = arith.mulf %135, %149 : vector<2x64xf32>
    %152 = arith.addf %150, %151 : vector<2x64xf32>
    %153 = math.tanh %152 : vector<2x64xf32>
    %154 = arith.mulf %147, %153 : vector<2x64xf32>
    %155 = arith.addf %122, %154 : vector<2x64xf32>
    %156 = vector.extract_strided_slice %19 {offsets = [0, 4, 0], sizes = [2, 1, 256], strides = [1, 1, 1]} : vector<2x8x256xf32> to vector<2x1x256xf32>
    %157 = vector.shape_cast %156 : vector<2x1x256xf32> to vector<2x256xf32>
    %158 = vector.extract_strided_slice %19 {offsets = [0, 3, 0], sizes = [2, 1, 256], strides = [1, 1, 1]} : vector<2x8x256xf32> to vector<2x1x256xf32>
    %159 = vector.shape_cast %158 : vector<2x1x256xf32> to vector<2x256xf32>
    %160 = arith.select %18, %157, %159 : vector<2x256xi1>, vector<2x256xf32>
    %cst_25 = arith.constant dense<0.000000e+00> : vector<2x256xf32>
    %161 = tpu.matmul %154, %20, %cst_25 {dimension_numbers = #tpu.dot_dimension_numbers<[1], [0], [0], [1], [0, 0, 1, 1], [], []>} : vector<2x64xf32>, vector<64x256xf32>, vector<2x256xf32> -> vector<2x256xf32>
    %162 = arith.addf %160, %161 : vector<2x256xf32>
    %163 = vector.extract_strided_slice %162 {offsets = [0, 0], sizes = [2, 64], strides = [1, 1]} : vector<2x256xf32> to vector<2x64xf32>
    %164 = arith.negf %163 : vector<2x64xf32>
    %165 = math.exp %164 : vector<2x64xf32>
    %cst_26 = arith.constant 1.000000e+00 : f32
    %166 = vector.broadcast %cst_26 : f32 to vector<2x64xf32>
    %167 = arith.addf %166, %165 : vector<2x64xf32>
    %168 = arith.divf %166, %167 : vector<2x64xf32>
    %169 = vector.extract_strided_slice %162 {offsets = [0, 64], sizes = [2, 64], strides = [1, 1]} : vector<2x256xf32> to vector<2x64xf32>
    %170 = arith.negf %169 : vector<2x64xf32>
    %171 = math.exp %170 : vector<2x64xf32>
    %cst_27 = arith.constant 1.000000e+00 : f32
    %172 = vector.broadcast %cst_27 : f32 to vector<2x64xf32>
    %173 = arith.addf %172, %171 : vector<2x64xf32>
    %174 = arith.divf %172, %173 : vector<2x64xf32>
    %175 = vector.extract_strided_slice %162 {offsets = [0, 128], sizes = [2, 64], strides = [1, 1]} : vector<2x256xf32> to vector<2x64xf32>
    %176 = arith.negf %175 : vector<2x64xf32>
    %177 = math.exp %176 : vector<2x64xf32>
    %cst_28 = arith.constant 1.000000e+00 : f32
    %178 = vector.broadcast %cst_28 : f32 to vector<2x64xf32>
    %179 = arith.addf %178, %177 : vector<2x64xf32>
    %180 = arith.divf %178, %179 : vector<2x64xf32>
    %181 = vector.extract_strided_slice %162 {offsets = [0, 192], sizes = [2, 64], strides = [1, 1]} : vector<2x256xf32> to vector<2x64xf32>
    %182 = math.tanh %181 : vector<2x64xf32>
    %183 = arith.mulf %174, %152 : vector<2x64xf32>
    %184 = arith.mulf %168, %182 : vector<2x64xf32>
    %185 = arith.addf %183, %184 : vector<2x64xf32>
    %186 = math.tanh %185 : vector<2x64xf32>
    %187 = arith.mulf %180, %186 : vector<2x64xf32>
    %188 = arith.addf %155, %187 : vector<2x64xf32>
    %189 = vector.extract_strided_slice %19 {offsets = [0, 5, 0], sizes = [2, 1, 256], strides = [1, 1, 1]} : vector<2x8x256xf32> to vector<2x1x256xf32>
    %190 = vector.shape_cast %189 : vector<2x1x256xf32> to vector<2x256xf32>
    %191 = vector.extract_strided_slice %19 {offsets = [0, 2, 0], sizes = [2, 1, 256], strides = [1, 1, 1]} : vector<2x8x256xf32> to vector<2x1x256xf32>
    %192 = vector.shape_cast %191 : vector<2x1x256xf32> to vector<2x256xf32>
    %193 = arith.select %18, %190, %192 : vector<2x256xi1>, vector<2x256xf32>
    %cst_29 = arith.constant dense<0.000000e+00> : vector<2x256xf32>
    %194 = tpu.matmul %187, %20, %cst_29 {dimension_numbers = #tpu.dot_dimension_numbers<[1], [0], [0], [1], [0, 0, 1, 1], [], []>} : vector<2x64xf32>, vector<64x256xf32>, vector<2x256xf32> -> vector<2x256xf32>
    %195 = arith.addf %193, %194 : vector<2x256xf32>
    %196 = vector.extract_strided_slice %195 {offsets = [0, 0], sizes = [2, 64], strides = [1, 1]} : vector<2x256xf32> to vector<2x64xf32>
    %197 = arith.negf %196 : vector<2x64xf32>
    %198 = math.exp %197 : vector<2x64xf32>
    %cst_30 = arith.constant 1.000000e+00 : f32
    %199 = vector.broadcast %cst_30 : f32 to vector<2x64xf32>
    %200 = arith.addf %199, %198 : vector<2x64xf32>
    %201 = arith.divf %199, %200 : vector<2x64xf32>
    %202 = vector.extract_strided_slice %195 {offsets = [0, 64], sizes = [2, 64], strides = [1, 1]} : vector<2x256xf32> to vector<2x64xf32>
    %203 = arith.negf %202 : vector<2x64xf32>
    %204 = math.exp %203 : vector<2x64xf32>
    %cst_31 = arith.constant 1.000000e+00 : f32
    %205 = vector.broadcast %cst_31 : f32 to vector<2x64xf32>
    %206 = arith.addf %205, %204 : vector<2x64xf32>
    %207 = arith.divf %205, %206 : vector<2x64xf32>
    %208 = vector.extract_strided_slice %195 {offsets = [0, 128], sizes = [2, 64], strides = [1, 1]} : vector<2x256xf32> to vector<2x64xf32>
    %209 = arith.negf %208 : vector<2x64xf32>
    %210 = math.exp %209 : vector<2x64xf32>
    %cst_32 = arith.constant 1.000000e+00 : f32
    %211 = vector.broadcast %cst_32 : f32 to vector<2x64xf32>
    %212 = arith.addf %211, %210 : vector<2x64xf32>
    %213 = arith.divf %211, %212 : vector<2x64xf32>
    %214 = vector.extract_strided_slice %195 {offsets = [0, 192], sizes = [2, 64], strides = [1, 1]} : vector<2x256xf32> to vector<2x64xf32>
    %215 = math.tanh %214 : vector<2x64xf32>
    %216 = arith.mulf %207, %185 : vector<2x64xf32>
    %217 = arith.mulf %201, %215 : vector<2x64xf32>
    %218 = arith.addf %216, %217 : vector<2x64xf32>
    %219 = math.tanh %218 : vector<2x64xf32>
    %220 = arith.mulf %213, %219 : vector<2x64xf32>
    %221 = arith.addf %188, %220 : vector<2x64xf32>
    %222 = vector.extract_strided_slice %19 {offsets = [0, 6, 0], sizes = [2, 1, 256], strides = [1, 1, 1]} : vector<2x8x256xf32> to vector<2x1x256xf32>
    %223 = vector.shape_cast %222 : vector<2x1x256xf32> to vector<2x256xf32>
    %224 = vector.extract_strided_slice %19 {offsets = [0, 1, 0], sizes = [2, 1, 256], strides = [1, 1, 1]} : vector<2x8x256xf32> to vector<2x1x256xf32>
    %225 = vector.shape_cast %224 : vector<2x1x256xf32> to vector<2x256xf32>
    %226 = arith.select %18, %223, %225 : vector<2x256xi1>, vector<2x256xf32>
    %cst_33 = arith.constant dense<0.000000e+00> : vector<2x256xf32>
    %227 = tpu.matmul %220, %20, %cst_33 {dimension_numbers = #tpu.dot_dimension_numbers<[1], [0], [0], [1], [0, 0, 1, 1], [], []>} : vector<2x64xf32>, vector<64x256xf32>, vector<2x256xf32> -> vector<2x256xf32>
    %228 = arith.addf %226, %227 : vector<2x256xf32>
    %229 = vector.extract_strided_slice %228 {offsets = [0, 0], sizes = [2, 64], strides = [1, 1]} : vector<2x256xf32> to vector<2x64xf32>
    %230 = arith.negf %229 : vector<2x64xf32>
    %231 = math.exp %230 : vector<2x64xf32>
    %cst_34 = arith.constant 1.000000e+00 : f32
    %232 = vector.broadcast %cst_34 : f32 to vector<2x64xf32>
    %233 = arith.addf %232, %231 : vector<2x64xf32>
    %234 = arith.divf %232, %233 : vector<2x64xf32>
    %235 = vector.extract_strided_slice %228 {offsets = [0, 64], sizes = [2, 64], strides = [1, 1]} : vector<2x256xf32> to vector<2x64xf32>
    %236 = arith.negf %235 : vector<2x64xf32>
    %237 = math.exp %236 : vector<2x64xf32>
    %cst_35 = arith.constant 1.000000e+00 : f32
    %238 = vector.broadcast %cst_35 : f32 to vector<2x64xf32>
    %239 = arith.addf %238, %237 : vector<2x64xf32>
    %240 = arith.divf %238, %239 : vector<2x64xf32>
    %241 = vector.extract_strided_slice %228 {offsets = [0, 128], sizes = [2, 64], strides = [1, 1]} : vector<2x256xf32> to vector<2x64xf32>
    %242 = arith.negf %241 : vector<2x64xf32>
    %243 = math.exp %242 : vector<2x64xf32>
    %cst_36 = arith.constant 1.000000e+00 : f32
    %244 = vector.broadcast %cst_36 : f32 to vector<2x64xf32>
    %245 = arith.addf %244, %243 : vector<2x64xf32>
    %246 = arith.divf %244, %245 : vector<2x64xf32>
    %247 = vector.extract_strided_slice %228 {offsets = [0, 192], sizes = [2, 64], strides = [1, 1]} : vector<2x256xf32> to vector<2x64xf32>
    %248 = math.tanh %247 : vector<2x64xf32>
    %249 = arith.mulf %240, %218 : vector<2x64xf32>
    %250 = arith.mulf %234, %248 : vector<2x64xf32>
    %251 = arith.addf %249, %250 : vector<2x64xf32>
    %252 = math.tanh %251 : vector<2x64xf32>
    %253 = arith.mulf %246, %252 : vector<2x64xf32>
    %254 = arith.addf %221, %253 : vector<2x64xf32>
    %255 = vector.extract_strided_slice %19 {offsets = [0, 7, 0], sizes = [2, 1, 256], strides = [1, 1, 1]} : vector<2x8x256xf32> to vector<2x1x256xf32>
    %256 = vector.shape_cast %255 : vector<2x1x256xf32> to vector<2x256xf32>
    %257 = vector.extract_strided_slice %19 {offsets = [0, 0, 0], sizes = [2, 1, 256], strides = [1, 1, 1]} : vector<2x8x256xf32> to vector<2x1x256xf32>
    %258 = vector.shape_cast %257 : vector<2x1x256xf32> to vector<2x256xf32>
    %259 = arith.select %18, %256, %258 : vector<2x256xi1>, vector<2x256xf32>
    %cst_37 = arith.constant dense<0.000000e+00> : vector<2x256xf32>
    %260 = tpu.matmul %253, %20, %cst_37 {dimension_numbers = #tpu.dot_dimension_numbers<[1], [0], [0], [1], [0, 0, 1, 1], [], []>} : vector<2x64xf32>, vector<64x256xf32>, vector<2x256xf32> -> vector<2x256xf32>
    %261 = arith.addf %259, %260 : vector<2x256xf32>
    %262 = vector.extract_strided_slice %261 {offsets = [0, 0], sizes = [2, 64], strides = [1, 1]} : vector<2x256xf32> to vector<2x64xf32>
    %263 = arith.negf %262 : vector<2x64xf32>
    %264 = math.exp %263 : vector<2x64xf32>
    %cst_38 = arith.constant 1.000000e+00 : f32
    %265 = vector.broadcast %cst_38 : f32 to vector<2x64xf32>
    %266 = arith.addf %265, %264 : vector<2x64xf32>
    %267 = arith.divf %265, %266 : vector<2x64xf32>
    %268 = vector.extract_strided_slice %261 {offsets = [0, 64], sizes = [2, 64], strides = [1, 1]} : vector<2x256xf32> to vector<2x64xf32>
    %269 = arith.negf %268 : vector<2x64xf32>
    %270 = math.exp %269 : vector<2x64xf32>
    %cst_39 = arith.constant 1.000000e+00 : f32
    %271 = vector.broadcast %cst_39 : f32 to vector<2x64xf32>
    %272 = arith.addf %271, %270 : vector<2x64xf32>
    %273 = arith.divf %271, %272 : vector<2x64xf32>
    %274 = vector.extract_strided_slice %261 {offsets = [0, 128], sizes = [2, 64], strides = [1, 1]} : vector<2x256xf32> to vector<2x64xf32>
    %275 = arith.negf %274 : vector<2x64xf32>
    %276 = math.exp %275 : vector<2x64xf32>
    %cst_40 = arith.constant 1.000000e+00 : f32
    %277 = vector.broadcast %cst_40 : f32 to vector<2x64xf32>
    %278 = arith.addf %277, %276 : vector<2x64xf32>
    %279 = arith.divf %277, %278 : vector<2x64xf32>
    %280 = vector.extract_strided_slice %261 {offsets = [0, 192], sizes = [2, 64], strides = [1, 1]} : vector<2x256xf32> to vector<2x64xf32>
    %281 = math.tanh %280 : vector<2x64xf32>
    %282 = arith.mulf %273, %251 : vector<2x64xf32>
    %283 = arith.mulf %267, %281 : vector<2x64xf32>
    %284 = arith.addf %282, %283 : vector<2x64xf32>
    %285 = math.tanh %284 : vector<2x64xf32>
    %286 = arith.mulf %279, %285 : vector<2x64xf32>
    %287 = arith.addf %254, %286 : vector<2x64xf32>
    %cst_41 = arith.constant 1.250000e-01 : f32
    %288 = vector.broadcast %cst_41 : f32 to vector<2x64xf32>
    %289 = arith.mulf %287, %288 : vector<2x64xf32>
    %c0_42 = arith.constant 0 : index
    %c0_43 = arith.constant 0 : index
    %290 = vector.load %arg2[%c0_42, %c0_43] : memref<64x1xf32, #tpu.memory_space<vmem>>, vector<64x1xf32>
    %cst_44 = arith.constant dense<0.000000e+00> : vector<2x1xf32>
    %291 = tpu.matmul %289, %290, %cst_44 {dimension_numbers = #tpu.dot_dimension_numbers<[1], [0], [0], [1], [0, 0, 1, 1], [], []>} : vector<2x64xf32>, vector<64x1xf32>, vector<2x1xf32> -> vector<2x1xf32>
    %c0_45 = arith.constant 0 : index
    %c0_46 = arith.constant 0 : index
    %292 = vector.load %arg3[%c0_45, %c0_46] : memref<1x1xf32, #tpu.memory_space<vmem>>, vector<1x1xf32>
    %293 = vector.broadcast %292 : vector<1x1xf32> to vector<2x1xf32>
    %294 = arith.addf %291, %293 : vector<2x1xf32>
    %c0_47 = arith.constant 0 : index
    %c0_48 = arith.constant 0 : index
    %295 = vector.load %arg4[%c0_47, %c0_48] : memref<2x1xf32, #tpu.memory_space<vmem>>, vector<2x1xf32>
    tpu.vector_store %arg4[%c0_47, %c0_48], %294 {strides = array<i32>} : memref<2x1xf32, #tpu.memory_space<vmem>>, vector<2x1xf32>,
    return
  }
}

</mosaic_0001>

<bundles_post_ra>
// kernel: tpu_custom_call.1
= control target key start
LH: loop header
LB: loop body
LE: loop exit
PB: predicated region body
PF: predicated region fallthrough
CT: control target
= control target key end

     0   :  { %s1792_s0 = inlined_call_operand.vmem [shape: f32[2,8,256], index: 0, kind: input, shape index: {}]   ;;  %s1793_s1 = inlined_call_operand.hbm [shape: f32[64,256], index: 1, kind: input, shape index: {}]   ;;  %s1794_s2 = inlined_call_operand.vmem [shape: f32[64,1], index: 2, kind: input, shape index: {}]   ;;  %s1795_s3 = inlined_call_operand.<no memory space> [shape: f32[1,1], index: 3, kind: input, shape index: {}]   ;;  %s1796_s4 = inlined_call_operand.vmem [shape: f32[2,1], index: 4, kind: output, shape index: {}]  }
   0x1   :  { %v9_v0 = vstv %s1795_s3 }
   0x2   :  { %10 = vst [vmem:[#allocation2] sm:$0x1] %v9_v0 }
   0x3   :  { %11 = vsyncpa [#allocation4], 0  ;;  %s1436_s17 = smov [#allocation3]   ;;  %s1412_s21 = scalar_lea.hbm %s1793_s1, 2048 }
   0x4   :  { %s19_s18 = sshll.u32 %s1436_s17, 4  ;;  %p1413_p0 = scmp.ne.s32.totalorder %s1793_s1, %s1412_s21  ;;  %s20_s18 = int_to_ptr.vmem [resolvable:$true] %s19_s18 }
   0x5   :  { %p1416_p1 = scmp.lt.u32.totalorder %s1412_s21, %s1793_s1 }
   0x7   :  { %p1418_p2 = pnand %p1416_p1, %p1413_p0 }
   0x9   :  { %1421 = shalt.err (!%p1418_p2)
}
   0xa   :  { %s1422_s3 = scalar_lea.vmem %s20_s18, 2048  ;;  %p1427_p4 = scmp.lt.s32.totalorder %s20_s18, %s20_s18 }
   0xb   :  { %p1423_p3 = scmp.ne.s32.totalorder %s20_s18, %s1422_s3  ;;  %p1428_p5 = scmp.lt.s32.totalorder %s1422_s3, %s1422_s3 }
   0xd   :  { %p1429_p6 = por %p1428_p5, %p1427_p4 }
   0xf   :  { %p1430_p7 = pnand %p1429_p6, %p1423_p3 }
  0x11   :  { %1433 = shalt.err (!%p1430_p7)
}
  0x12   :  { %s1437_s26 = smov 256   ;;  %s1438_s27 = smov 16  }
  0x13   :  { %25 = dma.hbm_to_vmem [thread:$0]  %s1793_s1, 2048, %s20_s18, [#allocation4], %s1437_s26, %s1437_s26, %s1438_s27  }
  0x14   :  { %1434 = dma.done.wait [#allocation4], 2048  }
  0x15   :  { %1435 = vsyncadd [#allocation4], 4294965248  ;;  %v1439_v1 = vmov 0.0   ;;  %v67_v2 = vld [vmem:[#allocation3 + $0x8] sm:$0xff]  ;;  %v69_v3 = vld [vmem:[#allocation3 + $0x18] sm:$0xff]  ;;  %v33_v26 = vlaneseq  ;;  %vm87_vm0 = vcmask 1041409  }
  0x16   :  { %171 = vmatprep.mubr.f32.mxu0 %v1439_v1  ;;  %294 = vmatprep.mubr.f32.mxu1 %v1439_v1  ;;  %v66_v4 = vld [vmem:[#allocation3] sm:$0xff]  ;;  %v1485_v5 = vpack.c.bf16 %v69_v3, %v67_v2  ;;  %v68_v6 = vld [vmem:[#allocation3 + $0x10] sm:$0xff]  ;;  %v71_v7 = vld [vmem:[#allocation3 + $0x28] sm:$0xff]  ;;  %s1440_s7 = smov 64   ;;  %vm103_vm3 = vcmask 523264   ;;  %vm1442_vm4 = vmmov 0  }
  0x17   :  { %v73_v8 = vld [vmem:[#allocation3 + $0x38] sm:$0xff]  ;;  %v1487_v9 = vpack.c.bf16 %v68_v6, %v66_v4  ;;  %v70_v11 = vld [vmem:[#allocation3 + $0x20] sm:$0xff]  ;;  %v72_v12 = vld [vmem:[#allocation3 + $0x30] sm:$0xff]  ;;  %v34_v27 = vand.u32 127, %v33_v26  ;;  %vm1109_vm5 = vcmask 1024  }
  0x18   :  { %v1489_v10 = vpack.c.bf16 %v73_v8, %v71_v7  ;;  %v75_v13 = vld [vmem:[#allocation3 + $0x48] sm:$0xff]  ;;  %1170 = vmatprep.subr.bf16.mxu0 %v1485_v5  ;;  %v77_v14 = vld [vmem:[#allocation3 + $0x58] sm:$0xff]  ;;  %1186 = vmatprep.subr.bf16.mxu1 %v1485_v5  ;;  %v1494_v15 = vpack.c.bf16 %v72_v12, %v70_v11  ;;  %v74_v17 = vld [vmem:[#allocation3 + $0x40] sm:$0xff] }
  0x19   :  { %1172 = vmatpush1.bf16.msra.mxu0 %v1487_v9  ;;  %1188 = vmatpush1.bf16.msra.mxu1 %v1487_v9  ;;  %v1498_v16 = vpack.c.bf16 %v77_v14, %v75_v13  ;;  %v76_v18 = vld [vmem:[#allocation3 + $0x50] sm:$0xff]  ;;  %v79_v19 = vld [vmem:[#allocation3 + $0x68] sm:$0xff]  ;;  %v81_v20 = vld [vmem:[#allocation3 + $0x78] sm:$0xff]  ;;  %v35_v28 = vadd.s32 128, %v34_v27  ;;  %v40_v45 = vand.u32 63, %v34_v27 }
  0x1a   :  { %1174 = vmatprep.subr.bf16.mxu0 %v1489_v10  ;;  %1190 = vmatprep.subr.bf16.mxu1 %v1489_v10  ;;  %v1502_v21 = vpack.c.bf16 %v76_v18, %v74_v17  ;;  %v1506_v22 = vpack.c.bf16 %v81_v20, %v79_v19  ;;  %v78_v23 = vld [vmem:[#allocation3 + $0x60] sm:$0xff]  ;;  %v80_v24 = vld [vmem:[#allocation3 + $0x70] sm:$0xff] }
  0x1b   :  { %v1510_v25 = vpack.c.bf16 %v80_v24, %v78_v23  ;;  %v1532_v29 = vld [vmem:[%s1792_s0 + $0x8] sm:$0xff]  ;;  %v1537_v30 = vld [vmem:[%s1792_s0 + $0x18] sm:$0xff]  ;;  %v47_v31 = vand.u32 63, %v35_v28  ;;  %v1561_v43 = vld [vmem:[%s1792_s0] sm:$0xff]  ;;  %vm1571_vm2 = vcmp.lt.s32.totalorder %v40_v45, 32 }
  0x1c   :  { %v89_v32 = vrot.slane %v1537_v30, 7  ;;  %v96_v33 = vrot.slane %v1532_v29, 7  ;;  %v97_v34 = vrot.slane %v1537_v30, 6  ;;  %v1566_v44 = vld [vmem:[%s1792_s0 + $0x10] sm:$0xff]  ;;  %v93_v47 = vrot.slane %v1561_v43, 7  ;;  %v1022_v49 = vld [vmem:[%s1794_s2 + $0x8] sm:$0xff] }
  0x1d   :  { %1176 = vmatpush1.bf16.msra.mxu0 %v1494_v15  ;;  %1192 = vmatpush1.bf16.msra.mxu1 %v1494_v15  ;;  %vm1542_vm1 = vcmp.lt.s32.totalorder %v47_v31, 32  ;;  %v86_v46 = vrot.slane %v1566_v44, 7  ;;  %v94_v48 = vrot.slane %v1566_v44, 6  ;;  %v213_v8 = vrot.slane %v1532_v29, 1 }
  0x1e   :  { %1178 = vmatprep.subr.bf16.mxu0 %v1498_v16  ;;  %1194 = vmatprep.subr.bf16.mxu1 %v1498_v16  ;;  %v1548_v36 = vsel %vm87_vm0, %v89_v32, %v1532_v29  ;;  %v1551_v37 = vsel %vm87_vm0, %v97_v34, %v96_v33  ;;  %v220_v11 = vrot.slane %v1532_v29, 6  ;;  %v221_v12 = vrot.slane %v1537_v30, 5 }
  0x1f   :  { %v102_v38 = vsel %vm1542_vm1, %v1548_v36, %v1551_v37  ;;  %v1577_v50 = vsel %vm87_vm0, %v86_v46, %v1561_v43  ;;  %v1580_v51 = vsel %vm87_vm0, %v94_v48, %v93_v47  ;;  %v1606_v13 = vsel %vm87_vm0, %v1537_v30, %v213_v8 }
  0x20   :  { %v101_v52 = vsel %vm1571_vm2, %v1577_v50, %v1580_v51  ;;  %v1609_v14 = vsel %vm87_vm0, %v221_v12, %v220_v11  ;;  %v211_v24 = vrot.slane %v1561_v43, 1  ;;  %v217_v26 = vrot.slane %v1561_v43, 6 }
  0x21   :  { %1180 = vmatpush1.bf16.msra.mxu0 %v1502_v21  ;;  %1196 = vmatpush1.bf16.msra.mxu1 %v1502_v21  ;;  %v226_v17 = vsel %vm1542_vm1, %v1606_v13, %v1609_v14  ;;  %v218_v27 = vrot.slane %v1566_v44, 5  ;;  %v334_v8 = vrot.slane %v1561_v43, 2  ;;  %v335_v11 = vrot.slane %v1566_v44, 1 }
  0x22   :  { %1182 = vmatprep.subr.bf16.mxu0 %v1506_v22  ;;  %1198 = vmatprep.subr.bf16.mxu1 %v1506_v22  ;;  %v1621_v28 = vsel %vm87_vm0, %v1566_v44, %v211_v24  ;;  %v342_v12 = vrot.slane %v1561_v43, 5 }
  0x23   :  { %v1624_v31 = vsel %vm87_vm0, %v218_v27, %v217_v26 }
  0x24   :  { %v225_v32 = vsel %vm1571_vm2, %v1621_v28, %v1624_v31 }
  0x25   :  { %1184 = vmatpush1.bf16.msra.mxu0 %v1510_v25  ;;  %1200 = vmatpush1.bf16.msra.mxu1 %v1510_v25 }
  0x26   :  { %1202 = vmatprep.subr.bf16.mxu0 %v1485_v5  ;;  %1218 = vmatprep.subr.bf16.mxu1 %v1485_v5 }
  0x28   :  { %172 = vmatmul.mubr.f32.vlgmr.msra.gmra.mrb[0].mxu0 %v1439_v1 }
  0x29   :  { %1204 = vmatpush1.bf16.msra.mxu0 %v1487_v9  ;;  %419 = vmatprep.mubr.f32.mxu0 %v1439_v1 }
  0x2a   :  { %1206 = vmatprep.subr.bf16.mxu0 %v1489_v10 }
  0x2d   :  { %1208 = vmatpush1.bf16.msra.mxu0 %v1494_v15 }
  0x2e   :  { %1210 = vmatprep.subr.bf16.mxu0 %v1498_v16 }
  0x31   :  { %1212 = vmatpush1.bf16.msra.mxu0 %v1502_v21 }
  0x32   :  { %1214 = vmatprep.subr.bf16.mxu0 %v1506_v22 }
  0x35   :  { %1216 = vmatpush1.bf16.msra.mxu0 %v1510_v25 }
  0x36   :  { %1234 = vmatprep.subr.bf16.mxu0 %v1485_v5 }
  0xfb   :  { %v173_v39 = vpop.f32.mrb[0].mxu0 }
  0xfc   :  { %v175_v40 = vpop.f32.mrb[1].mxu0  ;;  %v178_v53 = vadd.f32 %v173_v39, %v101_v52 }
  0xfd   :  { %v179_v41 = vadd.f32 %v175_v40, %v102_v38 }
  0xfe   :  { %v1116_v54 = vmul.f32 -1.442695, %v178_v53 }
  0xff   :  { %1316 = vtanh.f32 %v179_v41  ;;  %v1117_v0 = vmul.f32 -1.442695, %v179_v41 }
 0x100   :  { %1318 = vpow2.f32 %v1116_v54 }
 0x109   :  { %v1317_v42 = vpop.eup %1316 }
 0x10a   :  { %195 = vrot.lane.b32.xlu0 %v1317_v42, %s1440_s7  ;;  %v1319_v55 = vpop.eup %1318 }
 0x10b   :  { %v183_v56 = vadd.f32 1.0, %v1319_v55 }
 0x10d   :  { %1320 = vrcp.f32 %v183_v56 }
 0x117   :  { %v1321_v57 = vpop.eup %1320 }
 0x118   :  { %v193_v60 = vmul.f32 0.0, %v1321_v57 }
 0x17c   :  { %v196_v58 = vpop.permute.xlu0 %195 }
 0x17d   :  { %v198_v59 = vmul.f32 %v1321_v57, %v196_v58  ;;  %v337_v58 = vrot.slane %v1532_v29, 2 }
 0x17f   :  { %200 = vrot.lane.b32.xlu0 %v198_v59, %s1440_s7  ;;  %v338_v59 = vrot.slane %v1537_v30, 1 }
 0x1f1   :  { %v201_v61 = vpop.permute.xlu0 %200 }
 0x1f2   :  { %v203_v62 = vadd.f32 %v201_v61, %v193_v60  ;;  %v345_v60 = vrot.slane %v1532_v29, 5  ;;  %v346_v61 = vrot.slane %v1537_v30, 4 }
 0x1f4   :  { %1322 = vtanh.f32 %v203_v62 }
 0x1f5   :  { %1324 = vpow2.f32 %v1117_v0 }
 0x1fe   :  { %v1323_v63 = vpop.eup %1322 }
 0x1ff   :  { %206 = vrot.lane.b32.xlu1 %v1323_v63, %s1440_s7  ;;  %v1325_v2 = vpop.eup %1324  ;;  %v1650_v63 = vsel %vm87_vm0, %v346_v61, %v345_v60 }
 0x200   :  { %v189_v3 = vadd.f32 1.0, %v1325_v2 }
 0x202   :  { %1326 = vrcp.f32 %v189_v3 }
 0x20c   :  { %v1327_v4 = vpop.eup %1326 }
 0x271   :  { %v207_v6 = vpop.permute.xlu1 %206 }
 0x272   :  { %v1588_v7 = vmul.f32 %v1327_v4, %v207_v6 }
 0x274   :  { %1118 = vmatmul.mubr.msk.f32.vlgmr.msra.gmra.mrb[0].mxu1 %vm103_vm3, %v1588_v7 }
 0x275   :  { %1220 = vmatpush1.bf16.msra.mxu1 %v1487_v9  ;;  %544 = vmatprep.mubr.f32.mxu1 %v1439_v1 }
 0x276   :  { %1222 = vmatprep.subr.bf16.mxu1 %v1489_v10 }
 0x279   :  { %1224 = vmatpush1.bf16.msra.mxu1 %v1494_v15 }
 0x27a   :  { %1226 = vmatprep.subr.bf16.mxu1 %v1498_v16 }
 0x27d   :  { %1228 = vmatpush1.bf16.msra.mxu1 %v1502_v21 }
 0x27e   :  { %1230 = vmatprep.subr.bf16.mxu1 %v1506_v22 }
 0x281   :  { %1232 = vmatpush1.bf16.msra.mxu1 %v1510_v25 }
 0x282   :  { %1250 = vmatprep.subr.bf16.mxu1 %v1485_v5 }
 0x347   :  { %v296_v18 = vpop.f32.mrb[0].mxu1 }
 0x348   :  { %v298_v19 = vpop.f32.mrb[1].mxu1  ;;  %v301_v33 = vadd.f32 %v296_v18, %v225_v32  ;;  %v1662_v18 = vsel %vm87_vm0, %v335_v11, %v334_v8 }
 0x349   :  { %v302_v20 = vadd.f32 %v298_v19, %v226_v17  ;;  %v343_v17 = vrot.slane %v1566_v44, 4 }
 0x34a   :  { %v1119_v34 = vmul.f32 -1.442695, %v301_v33 }
 0x34b   :  { %1328 = vtanh.f32 %v302_v20  ;;  %v1120_v52 = vmul.f32 -1.442695, %v302_v20  ;;  %v1665_v19 = vsel %vm87_vm0, %v343_v17, %v342_v12 }
 0x34c   :  { %1330 = vpow2.f32 %v1119_v34  ;;  %v350_v20 = vsel %vm1571_vm2, %v1662_v18, %v1665_v19 }
 0x355   :  { %v1329_v23 = vpop.eup %1328 }
 0x356   :  { %318 = vrot.lane.b32.xlu1 %v1329_v23, %s1440_s7  ;;  %v1331_v38 = vpop.eup %1330 }
 0x357   :  { %v306_v39 = vadd.f32 1.0, %v1331_v38 }
 0x359   :  { %1332 = vrcp.f32 %v306_v39 }
 0x363   :  { %v1333_v40 = vpop.eup %1332 }
 0x364   :  { %v316_v45 = vmul.f32 %v1333_v40, %v203_v62  ;;  %v1647_v62 = vsel %vm87_vm0, %v338_v59, %v337_v58 }
 0x365   :  { %v351_v0 = vsel %vm1542_vm1, %v1647_v62, %v1650_v63 }
 0x3c8   :  { %v319_v41 = vpop.permute.xlu1 %318 }
 0x3c9   :  { %v321_v42 = vmul.f32 %v1333_v40, %v319_v41 }
 0x3cb   :  { %323 = vrot.lane.b32.xlu0 %v321_v42, %s1440_s7 }
 0x43d   :  { %v324_v46 = vpop.permute.xlu0 %323 }
 0x43e   :  { %v326_v47 = vadd.f32 %v324_v46, %v316_v45 }
 0x440   :  { %1334 = vtanh.f32 %v326_v47 }
 0x441   :  { %1336 = vpow2.f32 %v1120_v52 }
 0x44a   :  { %v1335_v48 = vpop.eup %1334 }
 0x44b   :  { %329 = vrot.lane.b32.xlu1 %v1335_v48, %s1440_s7  ;;  %v1337_v53 = vpop.eup %1336 }
 0x44c   :  { %v312_v54 = vadd.f32 1.0, %v1337_v53 }
 0x44e   :  { %1338 = vrcp.f32 %v312_v54 }
 0x458   :  { %v1339_v55 = vpop.eup %1338 }
 0x4bd   :  { %v330_v56 = vpop.permute.xlu1 %329 }
 0x4be   :  { %v332_v57 = vmul.f32 %v1339_v55, %v330_v56  ;;  %v470_v56 = vrot.slane %v1532_v29, 4 }
 0x4c0   :  { %1121 = vmatmul.mubr.msk.f32.vlgmr.msra.gmra.mrb[2].mxu0 %vm103_vm3, %v332_v57  ;;  %v333_v53 = vadd.f32 %v332_v57, %v1588_v7  ;;  %v462_v7 = vrot.slane %v1532_v29, 3  ;;  %v471_v57 = vrot.slane %v1537_v30, 3  ;;  %v460_v29 = vrot.slane %v1566_v44, 2 }
 0x4c1   :  { %1236 = vmatpush1.bf16.msra.mxu0 %v1487_v9  ;;  %653 = vmatprep.mubr.f32.mxu0 %v1439_v1 }
 0x4c2   :  { %1238 = vmatprep.subr.bf16.mxu0 %v1489_v10  ;;  %v472_v59 = vsel %vm87_vm0, %v471_v57, %v470_v56 }
 0x4c5   :  { %1240 = vmatpush1.bf16.msra.mxu0 %v1494_v15 }
 0x4c6   :  { %1242 = vmatprep.subr.bf16.mxu0 %v1498_v16 }
 0x4c9   :  { %1244 = vmatpush1.bf16.msra.mxu0 %v1502_v21 }
 0x4ca   :  { %1246 = vmatprep.subr.bf16.mxu0 %v1506_v22 }
 0x4cd   :  { %1248 = vmatpush1.bf16.msra.mxu0 %v1510_v25 }
 0x4ce   :  { %1266 = vmatprep.subr.bf16.mxu0 %v1485_v5 }
 0x593   :  { %v421_v2 = vpop.f32.mrb[2].mxu0 }
 0x594   :  { %v423_v3 = vpop.f32.mrb[3].mxu0  ;;  %v426_v23 = vadd.f32 %v421_v2, %v350_v20 }
 0x595   :  { %v427_v4 = vadd.f32 %v423_v3, %v351_v0  ;;  %v459_v3 = vrot.slane %v1561_v43, 3 }
 0x596   :  { %v1122_v24 = vmul.f32 -1.442695, %v426_v23 }
 0x597   :  { %1340 = vtanh.f32 %v427_v4  ;;  %v1123_v42 = vmul.f32 -1.442695, %v427_v4  ;;  %v468_v4 = vrot.slane %v1566_v44, 3 }
 0x598   :  { %1342 = vpow2.f32 %v1122_v24 }
 0x5a1   :  { %v1341_v6 = vpop.eup %1340 }
 0x5a2   :  { %443 = vrot.lane.b32.xlu0 %v1341_v6, %s1440_s7  ;;  %v1343_v26 = vpop.eup %1342  ;;  %v461_v6 = vsel %vm87_vm0, %v460_v29, %v459_v3 }
 0x5a3   :  { %v431_v27 = vadd.f32 1.0, %v1343_v26 }
 0x5a5   :  { %1344 = vrcp.f32 %v431_v27 }
 0x5af   :  { %v1345_v32 = vpop.eup %1344 }
 0x5b0   :  { %v441_v38 = vmul.f32 %v1345_v32, %v326_v47  ;;  %v463_v47 = vrot.slane %v1537_v30, 2  ;;  %v467_v30 = vrot.slane %v1561_v43, 4 }
 0x5b2   :  { %v464_v58 = vsel %vm87_vm0, %v463_v47, %v462_v7  ;;  %v469_v8 = vsel %vm87_vm0, %v468_v4, %v467_v30 }
 0x5b3   :  { %v476_v60 = vsel %vm1542_vm1, %v464_v58, %v472_v59  ;;  %v475_v11 = vsel %vm1571_vm2, %v461_v6, %v469_v8 }
 0x614   :  { %v444_v33 = vpop.permute.xlu0 %443 }
 0x615   :  { %v446_v34 = vmul.f32 %v1345_v32, %v444_v33 }
 0x617   :  { %448 = vrot.lane.b32.xlu1 %v446_v34, %s1440_s7 }
 0x689   :  { %v449_v39 = vpop.permute.xlu1 %448 }
 0x68a   :  { %v451_v40 = vadd.f32 %v449_v39, %v441_v38 }
 0x68c   :  { %1346 = vtanh.f32 %v451_v40 }
 0x68d   :  { %1348 = vpow2.f32 %v1123_v42 }
 0x696   :  { %v1347_v41 = vpop.eup %1346 }
 0x697   :  { %454 = vrot.lane.b32.xlu0 %v1347_v41, %s1440_s7  ;;  %v1349_v45 = vpop.eup %1348 }
 0x698   :  { %v437_v46 = vadd.f32 1.0, %v1349_v45 }
 0x69a   :  { %1350 = vrcp.f32 %v437_v46 }
 0x6a4   :  { %v1351_v48 = vpop.eup %1350 }
 0x709   :  { %v455_v52 = vpop.permute.xlu0 %454 }
 0x70a   :  { %v457_v54 = vmul.f32 %v1351_v48, %v455_v52 }
 0x70c   :  { %v458_v55 = vadd.f32 %v457_v54, %v333_v53  ;;  %1124 = vmatmul.mubr.msk.f32.vlgmr.msra.gmra.mrb[2].mxu1 %vm103_vm3, %v457_v54 }
 0x70d   :  { %1252 = vmatpush1.bf16.msra.mxu1 %v1487_v9  ;;  %762 = vmatprep.mubr.f32.mxu1 %v1439_v1 }
 0x70e   :  { %1254 = vmatprep.subr.bf16.mxu1 %v1489_v10 }
 0x711   :  { %1256 = vmatpush1.bf16.msra.mxu1 %v1494_v15 }
 0x712   :  { %1258 = vmatprep.subr.bf16.mxu1 %v1498_v16 }
 0x715   :  { %1260 = vmatpush1.bf16.msra.mxu1 %v1502_v21 }
 0x716   :  { %1262 = vmatprep.subr.bf16.mxu1 %v1506_v22 }
 0x719   :  { %1264 = vmatpush1.bf16.msra.mxu1 %v1510_v25 }
 0x71a   :  { %1282 = vmatprep.subr.bf16.mxu1 %v1485_v5 }
 0x7df   :  { %v546_v61 = vpop.f32.mrb[2].mxu1 }
 0x7e0   :  { %v548_v0 = vpop.f32.mrb[3].mxu1  ;;  %v551_v12 = vadd.f32 %v546_v61, %v475_v11 }
 0x7e1   :  { %v552_v2 = vadd.f32 %v548_v0, %v476_v60 }
 0x7e2   :  { %v1125_v17 = vmul.f32 -1.442695, %v551_v12  ;;  %v694_v12 = vsel %vm1542_vm1, %v1650_v63, %v1647_v62 }
 0x7e3   :  { %1352 = vtanh.f32 %v552_v2  ;;  %v1126_v34 = vmul.f32 -1.442695, %v552_v2 }
 0x7e4   :  { %1354 = vpow2.f32 %v1125_v17 }
 0x7ed   :  { %v1353_v5 = vpop.eup %1352 }
 0x7ee   :  { %568 = vrot.lane.b32.xlu1 %v1353_v5, %s1440_s7  ;;  %v1355_v20 = vpop.eup %1354 }
 0x7ef   :  { %v556_v23 = vadd.f32 1.0, %v1355_v20 }
 0x7f1   :  { %1356 = vrcp.f32 %v556_v23 }
 0x7fb   :  { %v1357_v24 = vpop.eup %1356 }
 0x7fc   :  { %v566_v43 = vmul.f32 %v1357_v24, %v451_v40  ;;  %v585_v40 = vsel %vm1542_vm1, %v472_v59, %v464_v58 }
 0x860   :  { %v569_v26 = vpop.permute.xlu1 %568 }
 0x861   :  { %v571_v27 = vmul.f32 %v1357_v24, %v569_v26 }
 0x863   :  { %573 = vrot.lane.b32.xlu0 %v571_v27, %s1440_s7 }
 0x8d5   :  { %v574_v44 = vpop.permute.xlu0 %573 }
 0x8d6   :  { %v576_v32 = vadd.f32 %v574_v44, %v566_v43 }
 0x8d8   :  { %1358 = vtanh.f32 %v576_v32 }
 0x8d9   :  { %1360 = vpow2.f32 %v1126_v34 }
 0x8e2   :  { %v1359_v33 = vpop.eup %1358 }
 0x8e3   :  { %579 = vrot.lane.b32.xlu1 %v1359_v33, %s1440_s7  ;;  %v1361_v38 = vpop.eup %1360 }
 0x8e4   :  { %v562_v39 = vadd.f32 1.0, %v1361_v38 }
 0x8e6   :  { %1362 = vrcp.f32 %v562_v39  ;;  %v803_v39 = vsel %vm1542_vm1, %v1609_v14, %v1606_v13 }
 0x8f0   :  { %v1363_v41 = vpop.eup %1362 }
 0x955   :  { %v580_v42 = vpop.permute.xlu1 %579 }
 0x956   :  { %v582_v45 = vmul.f32 %v1363_v41, %v580_v42 }
 0x958   :  { %v583_v46 = vadd.f32 %v582_v45, %v458_v55  ;;  %1127 = vmatmul.mubr.msk.f32.vlgmr.msra.gmra.mrb[4].mxu0 %vm103_vm3, %v582_v45  ;;  %v584_v55 = vsel %vm1571_vm2, %v469_v8, %v461_v6 }
 0x959   :  { %1268 = vmatpush1.bf16.msra.mxu0 %v1487_v9  ;;  %871 = vmatprep.mubr.f32.mxu0 %v1439_v1 }
 0x95a   :  { %1270 = vmatprep.subr.bf16.mxu0 %v1489_v10 }
 0x95d   :  { %1272 = vmatpush1.bf16.msra.mxu0 %v1494_v15 }
 0x95e   :  { %1274 = vmatprep.subr.bf16.mxu0 %v1498_v16 }
 0x961   :  { %1276 = vmatpush1.bf16.msra.mxu0 %v1502_v21 }
 0x962   :  { %1278 = vmatprep.subr.bf16.mxu0 %v1506_v22 }
 0x965   :  { %1280 = vmatpush1.bf16.msra.mxu0 %v1510_v25 }
 0xa2b   :  { %v655_v48 = vpop.f32.mrb[4].mxu0 }
 0xa2c   :  { %v657_v52 = vpop.f32.mrb[5].mxu0  ;;  %v660_v7 = vadd.f32 %v655_v48, %v584_v55 }
 0xa2d   :  { %v661_v53 = vadd.f32 %v657_v52, %v585_v40  ;;  %v802_v40 = vsel %vm1571_vm2, %v1624_v31, %v1621_v28 }
 0xa2e   :  { %v1128_v47 = vmul.f32 -1.442695, %v660_v7 }
 0xa2f   :  { %1364 = vtanh.f32 %v661_v53  ;;  %v1129_v3 = vmul.f32 -1.442695, %v661_v53 }
 0xa30   :  { %1366 = vpow2.f32 %v1128_v47 }
 0xa39   :  { %v1365_v54 = vpop.eup %1364 }
 0xa3a   :  { %677 = vrot.lane.b32.xlu0 %v1365_v54, %s1440_s7  ;;  %v1367_v56 = vpop.eup %1366 }
 0xa3b   :  { %v665_v57 = vadd.f32 1.0, %v1367_v56 }
 0xa3d   :  { %1368 = vrcp.f32 %v665_v57 }
 0xa47   :  { %v1369_v60 = vpop.eup %1368 }
 0xa48   :  { %v675_v58 = vmul.f32 %v1369_v60, %v576_v32 }
 0xaac   :  { %v678_v61 = vpop.permute.xlu0 %677 }
 0xaad   :  { %v680_v0 = vmul.f32 %v1369_v60, %v678_v61 }
 0xaaf   :  { %682 = vrot.lane.b32.xlu1 %v680_v0, %s1440_s7 }
 0xb21   :  { %v683_v59 = vpop.permute.xlu1 %682 }
 0xb22   :  { %v685_v2 = vadd.f32 %v683_v59, %v675_v58 }
 0xb24   :  { %1370 = vtanh.f32 %v685_v2 }
 0xb25   :  { %1372 = vpow2.f32 %v1129_v3 }
 0xb2e   :  { %v1371_v5 = vpop.eup %1370 }
 0xb2f   :  { %688 = vrot.lane.b32.xlu0 %v1371_v5, %s1440_s7  ;;  %v1373_v29 = vpop.eup %1372 }
 0xb30   :  { %v671_v30 = vadd.f32 1.0, %v1373_v29 }
 0xb32   :  { %1374 = vrcp.f32 %v671_v30 }
 0xb3c   :  { %v1375_v4 = vpop.eup %1374 }
 0xba1   :  { %v689_v6 = vpop.permute.xlu0 %688 }
 0xba2   :  { %v691_v8 = vmul.f32 %v1375_v4, %v689_v6  ;;  %v911_v4 = vsel %vm1571_vm2, %v1580_v51, %v1577_v50  ;;  %v1023_v50 = vld [vmem:[%s1794_s2 + $0x10] sm:$0xff]  ;;  %v1441_v51 = vmov 0.0|0.0  }
 0xba3   :  { %1297 = vmatprep.subr.bf16.mxu0 %v1441_v51 }
 0xba4   :  { %v692_v11 = vadd.f32 %v691_v8, %v583_v46  ;;  %1130 = vmatmul.mubr.msk.f32.vlgmr.msra.gmra.mrb[4].mxu1 %vm103_vm3, %v691_v8 }
 0xba5   :  { %1284 = vmatpush1.bf16.msra.mxu1 %v1487_v9  ;;  %980 = vmatprep.mubr.f32.mxu1 %v1439_v1 }
 0xba6   :  { %1286 = vmatprep.subr.bf16.mxu1 %v1489_v10 }
 0xba9   :  { %1288 = vmatpush1.bf16.msra.mxu1 %v1494_v15  ;;  %v693_v15 = vsel %vm1571_vm2, %v1665_v19, %v1662_v18 }
 0xbaa   :  { %1290 = vmatprep.subr.bf16.mxu1 %v1498_v16 }
 0xbad   :  { %1292 = vmatpush1.bf16.msra.mxu1 %v1502_v21 }
 0xbae   :  { %1294 = vmatprep.subr.bf16.mxu1 %v1506_v22 }
 0xbb1   :  { %1296 = vmatpush1.bf16.msra.mxu1 %v1510_v25 }
 0xc77   :  { %v764_v9 = vpop.f32.mrb[4].mxu1 }
 0xc78   :  { %v766_v17 = vpop.f32.mrb[5].mxu1  ;;  %v769_v16 = vadd.f32 %v764_v9, %v693_v15  ;;  %v1021_v9 = vld [vmem:[%s1794_s2] sm:$0xff] }
 0xc79   :  { %v770_v20 = vadd.f32 %v766_v17, %v694_v12  ;;  %v1298_v17 = vpack.c.bf16 %v1022_v49, %v1021_v9  ;;  %v1025_v15 = vld [vmem:[%s1794_s2 + $0x20] sm:$0xff] }
 0xc7a   :  { %v1131_v21 = vmul.f32 -1.442695, %v769_v16  ;;  %v1026_v16 = vld [vmem:[%s1794_s2 + $0x28] sm:$0xff] }
 0xc7b   :  { %1376 = vtanh.f32 %v770_v20  ;;  %v1132_v44 = vmul.f32 -1.442695, %v770_v20  ;;  %v1024_v20 = vld [vmem:[%s1794_s2 + $0x18] sm:$0xff] }
 0xc7c   :  { %1378 = vpow2.f32 %v1131_v21  ;;  %v1304_v21 = vpack.c.bf16 %v1026_v16, %v1025_v15 }
 0xc85   :  { %v1377_v10 = vpop.eup %1376 }
 0xc86   :  { %786 = vrot.lane.b32.xlu1 %v1377_v10, %s1440_s7  ;;  %v1379_v22 = vpop.eup %1378  ;;  %v1301_v10 = vpack.c.bf16 %v1024_v20, %v1023_v50 }
 0xc87   :  { %v774_v25 = vadd.f32 1.0, %v1379_v22 }
 0xc89   :  { %1380 = vrcp.f32 %v774_v25 }
 0xc93   :  { %v1381_v23 = vpop.eup %1380 }
 0xc94   :  { %v784_v24 = vmul.f32 %v1381_v23, %v685_v2  ;;  %v912_v2 = vsel %vm1542_vm1, %v1551_v37, %v1548_v36 }
 0xcf8   :  { %v787_v62 = vpop.permute.xlu1 %786 }
 0xcf9   :  { %v789_v63 = vmul.f32 %v1381_v23, %v787_v62  ;;  %v1027_v62 = vld [vmem:[%s1794_s2 + $0x30] sm:$0xff] }
 0xcfb   :  { %791 = vrot.lane.b32.xlu0 %v789_v63, %s1440_s7  ;;  %v1028_v63 = vld [vmem:[%s1794_s2 + $0x38] sm:$0xff] }
 0xd6d   :  { %v792_v26 = vpop.permute.xlu0 %791 }
 0xd6e   :  { %v794_v27 = vadd.f32 %v792_v26, %v784_v24  ;;  %v1307_v24 = vpack.c.bf16 %v1028_v63, %v1027_v62 }
 0xd70   :  { %1382 = vtanh.f32 %v794_v27 }
 0xd71   :  { %1384 = vpow2.f32 %v1132_v44 }
 0xd7a   :  { %v1383_v43 = vpop.eup %1382 }
 0xd7b   :  { %797 = vrot.lane.b32.xlu1 %v1383_v43, %s1440_s7  ;;  %v1385_v18 = vpop.eup %1384 }
 0xd7c   :  { %v780_v19 = vadd.f32 1.0, %v1385_v18 }
 0xd7e   :  { %1386 = vrcp.f32 %v780_v19 }
 0xd88   :  { %v1387_v32 = vpop.eup %1386 }
 0xded   :  { %v798_v33 = vpop.permute.xlu1 %797 }
 0xdee   :  { %v800_v34 = vmul.f32 %v1387_v32, %v798_v33 }
 0xdf0   :  { %v801_v38 = vadd.f32 %v800_v34, %v692_v11  ;;  %1133 = vmatmul.mubr.msk.f32.vlgmr.msra.gmra.mrb[6].mxu0 %vm103_vm3, %v800_v34 }
 0xdf1   :  { %1299 = vmatpush3.bf16.msra.mxu0 %v1298_v17  ;;  %1166 = vmatprep.mubr.msk.f32.mxu0 %vm1442_vm4, %v1439_v1 }
 0xdf2   :  { %1300 = vmatprep.subr.bf16.mxu0 %v1441_v51 }
 0xdf5   :  { %1302 = vmatpush3.bf16.msra.mxu0 %v1301_v10 }
 0xdf6   :  { %1303 = vmatprep.subr.bf16.mxu0 %v1441_v51 }
 0xdf9   :  { %1305 = vmatpush3.bf16.msra.mxu0 %v1304_v21 }
 0xdfa   :  { %1306 = vmatprep.subr.bf16.mxu0 %v1441_v51 }
 0xdfd   :  { %1308 = vmatpush3.bf16.msra.mxu0 %v1307_v24 }
 0xec3   :  { %v873_v41 = vpop.f32.mrb[6].mxu0 }
 0xec4   :  { %v875_v42 = vpop.f32.mrb[7].mxu0  ;;  %v878_v48 = vadd.f32 %v873_v41, %v802_v40 }
 0xec5   :  { %v879_v45 = vadd.f32 %v875_v42, %v803_v39 }
 0xec6   :  { %v1134_v52 = vmul.f32 -1.442695, %v878_v48 }
 0xec7   :  { %1388 = vtanh.f32 %v879_v45  ;;  %v1135_v60 = vmul.f32 -1.442695, %v879_v45 }
 0xec8   :  { %1390 = vpow2.f32 %v1134_v52 }
 0xed1   :  { %v1389_v46 = vpop.eup %1388 }
 0xed2   :  { %895 = vrot.lane.b32.xlu0 %v1389_v46, %s1440_s7  ;;  %v1391_v53 = vpop.eup %1390 }
 0xed3   :  { %v883_v54 = vadd.f32 1.0, %v1391_v53 }
 0xed5   :  { %1392 = vrcp.f32 %v883_v54 }
 0xedf   :  { %v1393_v55 = vpop.eup %1392 }
 0xee0   :  { %v893_v7 = vmul.f32 %v1393_v55, %v794_v27 }
 0xf44   :  { %v896_v13 = vpop.permute.xlu0 %895 }
 0xf45   :  { %v898_v14 = vmul.f32 %v1393_v55, %v896_v13 }
 0xf47   :  { %900 = vrot.lane.b32.xlu1 %v898_v14, %s1440_s7 }
 0xfb9   :  { %v901_v47 = vpop.permute.xlu1 %900 }
 0xfba   :  { %v903_v56 = vadd.f32 %v901_v47, %v893_v7 }
 0xfbc   :  { %1394 = vtanh.f32 %v903_v56 }
 0xfbd   :  { %1396 = vpow2.f32 %v1135_v60 }
 0xfc6   :  { %v1395_v57 = vpop.eup %1394 }
 0xfc7   :  { %906 = vrot.lane.b32.xlu0 %v1395_v57, %s1440_s7  ;;  %v1397_v28 = vpop.eup %1396 }
 0xfc8   :  { %v889_v31 = vadd.f32 1.0, %v1397_v28 }
 0xfca   :  { %1398 = vrcp.f32 %v889_v31 }
 0xfd4   :  { %v1399_v61 = vpop.eup %1398 }
0x1039   :  { %v907_v0 = vpop.permute.xlu0 %906 }
0x103a   :  { %v909_v58 = vmul.f32 %v1399_v61, %v907_v0 }
0x103c   :  { %v910_v59 = vadd.f32 %v909_v58, %v801_v38  ;;  %1136 = vmatmul.mubr.msk.f32.vlgmr.msra.gmra.mrb[6].mxu1 %vm103_vm3, %v909_v58  ;;  %v1139_v38 = vld [vmem:[#allocation2] ss:$0 sm:$0xff] }
0x110f   :  { %v982_v5 = vpop.f32.mrb[6].mxu1 }
0x1110   :  { %v984_v3 = vpop.f32.mrb[7].mxu1  ;;  %v987_v6 = vadd.f32 %v982_v5, %v911_v4 }
0x1111   :  { %v988_v29 = vadd.f32 %v984_v3, %v912_v2 }
0x1112   :  { %v1137_v8 = vmul.f32 -1.442695, %v987_v6 }
0x1113   :  { %1400 = vtanh.f32 %v988_v29  ;;  %v1138_v27 = vmul.f32 -1.442695, %v988_v29 }
0x1114   :  { %1402 = vpow2.f32 %v1137_v8 }
0x111d   :  { %v1401_v30 = vpop.eup %1400 }
0x111e   :  { %1004 = vrot.lane.b32.xlu1 %v1401_v30, %s1440_s7  ;;  %v1403_v11 = vpop.eup %1402 }
0x111f   :  { %v992_v12 = vadd.f32 1.0, %v1403_v11 }
0x1121   :  { %1404 = vrcp.f32 %v992_v12 }
0x112b   :  { %v1405_v35 = vpop.eup %1404 }
0x112c   :  { %v1002_v22 = vmul.f32 %v1405_v35, %v903_v56 }
0x1190   :  { %v1005_v36 = vpop.permute.xlu1 %1004 }
0x1191   :  { %v1007_v37 = vmul.f32 %v1405_v35, %v1005_v36 }
0x1193   :  { %1009 = vrot.lane.b32.xlu0 %v1007_v37, %s1440_s7 }
0x1205   :  { %v1010_v25 = vpop.permute.xlu0 %1009 }
0x1206   :  { %v1012_v23 = vadd.f32 %v1010_v25, %v1002_v22 }
0x1208   :  { %1406 = vtanh.f32 %v1012_v23 }
0x1209   :  { %1408 = vpow2.f32 %v1138_v27 }
0x1212   :  { %v1407_v26 = vpop.eup %1406 }
0x1213   :  { %1015 = vrot.lane.b32.xlu1 %v1407_v26, %s1440_s7  ;;  %v1409_v43 = vpop.eup %1408 }
0x1214   :  { %v998_v44 = vadd.f32 1.0, %v1409_v43 }
0x1216   :  { %1410 = vrcp.f32 %v998_v44 }
0x1220   :  { %v1411_v18 = vpop.eup %1410 }
0x1285   :  { %v1016_v19 = vpop.permute.xlu1 %1015 }
0x1286   :  { %v1018_v32 = vmul.f32 %v1411_v18, %v1016_v19 }
0x1288   :  { %v1019_v33 = vadd.f32 %v1018_v32, %v910_v59 }
0x128a   :  { %v1020_v34 = vmul.f32 0.125, %v1019_v33 }
0x128c   :  { %1167 = vmatmul.mubr.msk.f32.vlgmr.msra.gmra.mrb[8].mxu0 %vm103_vm3, %v1020_v34 }
0x135f   :  { %v1105_v39 = vpop.f32.mrb[8].mxu0 }
0x1360   :  { %v1106_v41 = vadd.f32 %v1139_v38, %v1105_v39  ;;  %v1168_v1 = vpop.f32.mrb[9].mxu0 }
0x1362   :  { %1110 = vst.msk [vmem:[%s1796_s4] sm:$0x3] %vm1109_vm5, %v1106_v41 }
0x1363   :  { %1115 = vsyncpa [#allocation4], 1 }

</bundles_post_ra>
